<compile_context>
chip_gen: v5e
topology: v5e:2x2
jax: 0.10.0
libtpu: 0.0.40
codegen_flags: <defaults>
</compile_context>

<pallas_src>
import functools

import jax
import jax.numpy as jnp
from jax.experimental import pallas as pl
from jax.experimental.pallas import tpu as pltpu

_SUBLANE = 8                      # vreg sublane count (second-to-last dim)
_MAX_TM = 512                     # max rows per grid step
_V5E_SCOPED_VMEM = 16 * 1024 * 1024   # smallest default scoped VMEM limit


def _round_up(x: int, m: int) -> int:
    return ((x + m - 1) // m) * m


def _fused_mlp_kernel(*refs, num_layers: int, sigmoid_output: bool):
    """Fused MLP body.

    refs = (x_ref, w0_ref, b0_ref, w1_ref, b1_ref, ..., o_ref)
      x_ref:  (tm, K0)       VMEM, native float dtype
      wi_ref: (Ki, Ki+1)     VMEM, bf16, resident across the grid
      bi_ref: (1, Ki+1)      VMEM, f32, resident across the grid
      o_ref:  (tm, Kout)     VMEM
    The whole layer chain stays in VMEM/vregs; only x and the final output
    cross HBM.
    """
    x_ref = refs[0]
    o_ref = refs[-1]
    wb_refs = refs[1:-1]

    h = x_ref[...]
    for i in range(num_layers):
        w_ref = wb_refs[2 * i]
        b_ref = wb_refs[2 * i + 1]
        # bf16 MXU operands, f32 accumulation.
        y = jnp.dot(h.astype(jnp.bfloat16), w_ref[...],
                    preferred_element_type=jnp.float32)
        y = y + b_ref[...]                     # (1, N) broadcasts over rows
        if i < num_layers - 1:
            y = jnp.maximum(y, 0.0)            # ReLU on hidden layers
        h = y
    if sigmoid_output:
        h = jax.nn.sigmoid(h)                  # exp lowers to EUP
    o_ref[...] = h.astype(o_ref.dtype)


class MLPPallas:
    """Pallas re-implementation of the PyTorch SAM-decoder MLP module."""

    def __init__(self, input_dim, hidden_dim, output_dim, num_layers,
                 sigmoid_output=False, key=None):
        self.num_layers = num_layers
        self.sigmoid_output = sigmoid_output
        self.input_dim = input_dim
        self.output_dim = output_dim

        h = [hidden_dim] * (num_layers - 1)
        dims_in = [input_dim] + h
        dims_out = h + [output_dim]

        if key is None:
            key = jax.random.PRNGKey(0)

        # Raw f32 params (mimic nn.Linear init) kept for the plain-JAX
        # reference; the kernel consumes pre-transposed bf16 weights.
        self.params = []
        self.kernel_params = []
        for n, k in zip(dims_in, dims_out):
            key, wk, bk = jax.random.split(key, 3)
            bound = 1.0 / jnp.sqrt(jnp.float32(n))
            w = jax.random.uniform(wk, (k, n), jnp.float32, -bound, bound)
            b = jax.random.uniform(bk, (k,), jnp.float32, -bound, bound)
            self.params.append((w, b))
            # Pre-transpose once: (in, out), bf16 for the MXU; bias f32 (1, k).
            self.kernel_params.append(
                (w.T.astype(jnp.bfloat16), b.reshape(1, k)))

    def _vmem_bytes_estimate(self, tm: int, x_itemsize: int) -> int:
        total = 2 * tm * self.input_dim * x_itemsize     # double-buffered x
        total += 2 * tm * self.output_dim * x_itemsize   # double-buffered out
        for w_t, b in self.kernel_params:
            total += 2 * w_t.size * 2                    # bf16 weights, 2 bufs
            total += 2 * b.size * 4
        widest = max([self.input_dim]
                     + [w_t.shape[1] for w_t, _ in self.kernel_params])
        total += 4 * tm * widest * 4                     # live f32 intermediates
        return total

    def __call__(self, x):
        orig_shape = x.shape
        x2d = x.reshape(-1, orig_shape[-1])
        if x2d.dtype != jnp.bfloat16:
            x2d = x2d.astype(jnp.float32)    # no-op for f32 inputs
        out_dtype = x2d.dtype
        m = x2d.shape[0]

        # Row tiling: balanced tm, >= 2 grid steps when possible (v7x megacore),
        # rows padded only when strictly required.
        m8 = _round_up(max(m, 1), _SUBLANE)
        n_steps = -(-m8 // _MAX_TM)
        if n_steps == 1 and m8 >= 2 * _SUBLANE:
            n_steps = 2
        tm = _round_up(-(-m8 // n_steps), _SUBLANE)
        m_pad = tm * n_steps

        x_in = x2d if m_pad == m else jnp.pad(x2d, ((0, m_pad - m), (0, 0)))

        # Specs: x/out are tiled over the grid; weights/biases stay resident.
        in_specs = [pl.BlockSpec((tm, self.input_dim), lambda i: (i, 0))]
        flat_params = []
        for w_t, b in self.kernel_params:
            in_specs.append(pl.BlockSpec(w_t.shape, lambda i: (0, 0)))
            in_specs.append(pl.BlockSpec(b.shape, lambda i: (0, 0)))
            flat_params += [w_t, b]

        kernel = functools.partial(
            _fused_mlp_kernel,
            num_layers=self.num_layers,
            sigmoid_output=self.sigmoid_output,
        )

        est = self._vmem_bytes_estimate(tm, jnp.dtype(out_dtype).itemsize)
        if est > _V5E_SCOPED_VMEM:
            # Raise the scoped VMEM limit (v5e default is only 16 MiB).
            vmem_limit = int(min(max(est * 1.5, 32 * 1024 * 1024),
                                 100 * 1024 * 1024))
            cparams = pltpu.CompilerParams(
                dimension_semantics=("parallel",),
                vmem_limit_bytes=vmem_limit)
        else:
            cparams = pltpu.CompilerParams(dimension_semantics=("parallel",))

        out = pl.pallas_call(
            kernel,
            out_shape=jax.ShapeDtypeStruct((m_pad, self.output_dim), out_dtype),
            grid=(m_pad // tm,),
            in_specs=in_specs,
            out_specs=pl.BlockSpec((tm, self.output_dim), lambda i: (i, 0)),
            compiler_params=cparams,
        )(x_in, *flat_params)

        if m_pad != m:
            out = out[:m]
        return out.reshape(*orig_shape[:-1], self.output_dim)


def _reference_mlp_matched(mlp: MLPPallas, x):
    """Mirrors the kernel math exactly (bf16 MXU operands, f32 accumulation)."""
    x2d = x.reshape(-1, x.shape[-1])
    if x2d.dtype != jnp.bfloat16:
        x2d = x2d.astype(jnp.float32)
    h = x2d
    for i, (w_t, b) in enumerate(mlp.kernel_params):
        y = jnp.dot(h.astype(jnp.bfloat16), w_t,
                    preferred_element_type=jnp.float32) + b
        if i < mlp.num_layers - 1:
            y = jnp.maximum(y, 0.0)
        h = y
    if mlp.sigmoid_output:
        h = jax.nn.sigmoid(h)
    return h.astype(x2d.dtype).reshape(*x.shape[:-1], mlp.output_dim)


def _reference_mlp_f32(mlp: MLPPallas, x):
    """Plain f32 reference (matches the PyTorch forward semantics)."""
    x2d = x.reshape(-1, x.shape[-1]).astype(jnp.float32)
    for i, (w, b) in enumerate(mlp.params):
        y = x2d @ w.T + b
        if i < mlp.num_layers - 1:
            y = jnp.maximum(y, 0.0)
        x2d = y
    if mlp.sigmoid_output:
        x2d = jax.nn.sigmoid(x2d)
    return x2d.reshape(*x.shape[:-1], x2d.shape[-1])


if __name__ == "__main__":
    key = jax.random.PRNGKey(0)

    # --- Test 1: SAM-decoder-like dims, no sigmoid, M=16 -> 2 balanced steps ---
    kx, kp, key = jax.random.split(key, 3)
    batch, seq = 2, 8
    input_dim, hidden_dim, output_dim, num_layers = 32, 32, 16, 3

    x = jax.random.normal(kx, (batch, seq, input_dim), jnp.float32)
    mlp = MLPPallas(input_dim, hidden_dim, output_dim, num_layers,
                    sigmoid_output=False, key=kp)

    out = jax.block_until_ready(mlp(x))
    ref_m = _reference_mlp_matched(mlp, x)
    ref_f = _reference_mlp_f32(mlp, x)
    assert out.shape == (batch, seq, output_dim), out.shape
    assert jnp.allclose(out, ref_m, atol=5e-4, rtol=5e-4), \
        "mismatch vs matched (bf16) reference (test 1)"
    assert jnp.allclose(out, ref_f, atol=5e-2, rtol=5e-2), \
        "mismatch vs f32 reference (test 1)"

    # --- Test 2: sigmoid output, M=300 -> tm=152, 2 steps, small row pad ---
    kx2, kp2, key = jax.random.split(key, 3)
    batch2, seq2 = 3, 100
    in2, hid2, out2, layers2 = 64, 128, 4, 2
    x2 = jax.random.normal(kx2, (batch2, seq2, in2), jnp.float32)
    mlp2 = MLPPallas(in2, hid2, out2, layers2, sigmoid_output=True, key=kp2)

    y2 = jax.block_until_ready(mlp2(x2))
    ref2_m = _reference_mlp_matched(mlp2, x2)
    ref2_f = _reference_mlp_f32(mlp2, x2)
    assert y2.shape == (batch2, seq2, out2), y2.shape
    assert jnp.allclose(y2, ref2_m, atol=5e-4, rtol=5e-4), \
        "mismatch vs matched (bf16) reference (test 2)"
    assert jnp.allclose(y2, ref2_f, atol=5e-2, rtol=5e-2), \
        "mismatch vs f32 reference (test 2)"

    # --- Test 3: native bf16 input path (no wrapper upcast) ---
    x3 = x.astype(jnp.bfloat16)
    y3 = jax.block_until_ready(mlp(x3))
    assert y3.shape == (batch, seq, output_dim), y3.shape
    assert y3.dtype == jnp.bfloat16, y3.dtype
    assert bool(jnp.all(jnp.isfinite(y3.astype(jnp.float32)))), "non-finite output (test 3)"

    print("KERNEL_OK")
</pallas_src>

<mosaic_0001>
module attributes {stable_mosaic.version = 11 : i64} {
  func.func @_fused_mlp_kernel(%arg0: i32, %arg1: memref<8x32xf32, #tpu.memory_space<vmem>>, %arg2: memref<32x32xbf16, #tpu.memory_space<vmem>>, %arg3: memref<1x32xf32, #tpu.memory_space<vmem>>, %arg4: memref<32x32xbf16, #tpu.memory_space<vmem>>, %arg5: memref<1x32xf32, #tpu.memory_space<vmem>>, %arg6: memref<32x16xbf16, #tpu.memory_space<vmem>>, %arg7: memref<1x16xf32, #tpu.memory_space<vmem>>, %arg8: memref<8x16xf32, #tpu.memory_space<vmem>>) attributes {dimension_semantics = [#tpu.dimension_semantics<parallel>], iteration_bounds = array<i64: 2>, scalar_prefetch = 0 : i64, scratch_operands = 0 : i64, tpu.core_type = #tpu.core_type<tc>, window_params = [{transform_indices = @transform_0, window_bounds = array<i64: 8, 32>}, {pipeline_mode = #tpu.pipeline_mode<synchronous>, transform_indices = @transform_1, window_bounds = array<i64: 32, 32>}, {pipeline_mode = #tpu.pipeline_mode<synchronous>, transform_indices = @transform_2, window_bounds = array<i64: 1, 32>}, {pipeline_mode = #tpu.pipeline_mode<synchronous>, transform_indices = @transform_3, window_bounds = array<i64: 32, 32>}, {pipeline_mode = #tpu.pipeline_mode<synchronous>, transform_indices = @transform_4, window_bounds = array<i64: 1, 32>}, {pipeline_mode = #tpu.pipeline_mode<synchronous>, transform_indices = @transform_5, window_bounds = array<i64: 32, 16>}, {pipeline_mode = #tpu.pipeline_mode<synchronous>, transform_indices = @transform_6, window_bounds = array<i64: 1, 16>}, {transform_indices = @transform_7, window_bounds = array<i64: 8, 16>}]} {
    %c0 = arith.constant 0 : index
    %c0_0 = arith.constant 0 : index
    %0 = vector.load %arg1[%c0, %c0_0] : memref<8x32xf32, #tpu.memory_space<vmem>>, vector<8x32xf32>
    %1 = arith.truncf %0 : vector<8x32xf32> to vector<8x32xbf16>
    %c0_1 = arith.constant 0 : index
    %c0_2 = arith.constant 0 : index
    %2 = vector.load %arg2[%c0_1, %c0_2] : memref<32x32xbf16, #tpu.memory_space<vmem>>, vector<32x32xbf16>
    %cst = arith.constant dense<0.000000e+00> : vector<8x32xf32>
    %3 = tpu.matmul %1, %2, %cst {dimension_numbers = #tpu.dot_dimension_numbers<[1], [0], [0], [1], [0, 0, 1, 1], [], []>} : vector<8x32xbf16>, vector<32x32xbf16>, vector<8x32xf32> -> vector<8x32xf32>
    %c0_3 = arith.constant 0 : index
    %c0_4 = arith.constant 0 : index
    %4 = vector.load %arg3[%c0_3, %c0_4] : memref<1x32xf32, #tpu.memory_space<vmem>>, vector<1x32xf32>
    %5 = vector.broadcast %4 : vector<1x32xf32> to vector<8x32xf32>
    %6 = arith.addf %3, %5 : vector<8x32xf32>
    %cst_5 = arith.constant 0.000000e+00 : f32
    %7 = vector.broadcast %cst_5 : f32 to vector<8x32xf32>
    %8 = arith.maximumf %6, %7 : vector<8x32xf32>
    %9 = arith.truncf %8 : vector<8x32xf32> to vector<8x32xbf16>
    %c0_6 = arith.constant 0 : index
    %c0_7 = arith.constant 0 : index
    %10 = vector.load %arg4[%c0_6, %c0_7] : memref<32x32xbf16, #tpu.memory_space<vmem>>, vector<32x32xbf16>
    %cst_8 = arith.constant dense<0.000000e+00> : vector<8x32xf32>
    %11 = tpu.matmul %9, %10, %cst_8 {dimension_numbers = #tpu.dot_dimension_numbers<[1], [0], [0], [1], [0, 0, 1, 1], [], []>} : vector<8x32xbf16>, vector<32x32xbf16>, vector<8x32xf32> -> vector<8x32xf32>
    %c0_9 = arith.constant 0 : index
    %c0_10 = arith.constant 0 : index
    %12 = vector.load %arg5[%c0_9, %c0_10] : memref<1x32xf32, #tpu.memory_space<vmem>>, vector<1x32xf32>
    %13 = vector.broadcast %12 : vector<1x32xf32> to vector<8x32xf32>
    %14 = arith.addf %11, %13 : vector<8x32xf32>
    %cst_11 = arith.constant 0.000000e+00 : f32
    %15 = vector.broadcast %cst_11 : f32 to vector<8x32xf32>
    %16 = arith.maximumf %14, %15 : vector<8x32xf32>
    %17 = arith.truncf %16 : vector<8x32xf32> to vector<8x32xbf16>
    %c0_12 = arith.constant 0 : index
    %c0_13 = arith.constant 0 : index
    %18 = vector.load %arg6[%c0_12, %c0_13] : memref<32x16xbf16, #tpu.memory_space<vmem>>, vector<32x16xbf16>
    %cst_14 = arith.constant dense<0.000000e+00> : vector<8x16xf32>
    %19 = tpu.matmul %17, %18, %cst_14 {dimension_numbers = #tpu.dot_dimension_numbers<[1], [0], [0], [1], [0, 0, 1, 1], [], []>} : vector<8x32xbf16>, vector<32x16xbf16>, vector<8x16xf32> -> vector<8x16xf32>
    %c0_15 = arith.constant 0 : index
    %c0_16 = arith.constant 0 : index
    %20 = vector.load %arg7[%c0_15, %c0_16] : memref<1x16xf32, #tpu.memory_space<vmem>>, vector<1x16xf32>
    %21 = vector.broadcast %20 : vector<1x16xf32> to vector<8x16xf32>
    %22 = arith.addf %19, %21 : vector<8x16xf32>
    %c0_17 = arith.constant 0 : index
    %c0_18 = arith.constant 0 : index
    %23 = vector.load %arg8[%c0_17, %c0_18] : memref<8x16xf32, #tpu.memory_space<vmem>>, vector<8x16xf32>
    tpu.vector_store %arg8[%c0_17, %c0_18], %22 {strides = array<i32>} : memref<8x16xf32, #tpu.memory_space<vmem>>, vector<8x16xf32>,
    return
  }
  func.func @transform_0(%arg0: i32) -> (i32, i32) {
    %c0_i32 = arith.constant 0 : i32
    %c0_i32_0 = arith.constant 0 : i32
    return %arg0, %c0_i32 : i32, i32
  }
  func.func @transform_1(%arg0: i32) -> (i32, i32) {
    %c0_i32 = arith.constant 0 : i32
    %c0_i32_0 = arith.constant 0 : i32
    %c0_i32_1 = arith.constant 0 : i32
    return %c0_i32, %c0_i32_0 : i32, i32
  }
  func.func @transform_2(%arg0: i32) -> (i32, i32) {
    %c0_i32 = arith.constant 0 : i32
    %c0_i32_0 = arith.constant 0 : i32
    %c0_i32_1 = arith.constant 0 : i32
    return %c0_i32, %c0_i32_0 : i32, i32
  }
  func.func @transform_3(%arg0: i32) -> (i32, i32) {
    %c0_i32 = arith.constant 0 : i32
    %c0_i32_0 = arith.constant 0 : i32
    %c0_i32_1 = arith.constant 0 : i32
    return %c0_i32, %c0_i32_0 : i32, i32
  }
  func.func @transform_4(%arg0: i32) -> (i32, i32) {
    %c0_i32 = arith.constant 0 : i32
    %c0_i32_0 = arith.constant 0 : i32
    %c0_i32_1 = arith.constant 0 : i32
    return %c0_i32, %c0_i32_0 : i32, i32
  }
  func.func @transform_5(%arg0: i32) -> (i32, i32) {
    %c0_i32 = arith.constant 0 : i32
    %c0_i32_0 = arith.constant 0 : i32
    %c0_i32_1 = arith.constant 0 : i32
    return %c0_i32, %c0_i32_0 : i32, i32
  }
  func.func @transform_6(%arg0: i32) -> (i32, i32) {
    %c0_i32 = arith.constant 0 : i32
    %c0_i32_0 = arith.constant 0 : i32
    %c0_i32_1 = arith.constant 0 : i32
    return %c0_i32, %c0_i32_0 : i32, i32
  }
  func.func @transform_7(%arg0: i32) -> (i32, i32) {
    %c0_i32 = arith.constant 0 : i32
    %c0_i32_0 = arith.constant 0 : i32
    return %arg0, %c0_i32 : i32, i32
  }
}

</mosaic_0001>

<bundles_post_ra>
// kernel: tpu_custom_call.1
= control target key start
LH: loop header
LB: loop body
LE: loop exit
PB: predicated region body
PF: predicated region fallthrough
CT: control target
= control target key end

     0   :  { %12 = vsyncpa [#allocation3], 0  ;;  %s939_s0 = inlined_call_operand.vmem [shape: f32[16,32], index: 0, kind: input, shape index: {}]   ;;  %s940_s1 = inlined_call_operand.hbm [shape: bf16[32,32], index: 1, kind: input, shape index: {}]   ;;  %s941_s2 = inlined_call_operand.vmem [shape: f32[1,32], index: 2, kind: input, shape index: {}]   ;;  %s942_s3 = inlined_call_operand.hbm [shape: bf16[32,32], index: 3, kind: input, shape index: {}]   ;;  %s943_s4 = inlined_call_operand.vmem [shape: f32[1,32], index: 4, kind: input, shape index: {}]   ;;  %s944_s5 = inlined_call_operand.vmem [shape: bf16[32,16], index: 5, kind: input, shape index: {}]   ;;  %s945_s6 = inlined_call_operand.vmem [shape: f32[1,16], index: 6, kind: input, shape index: {}]   ;;  %s946_s7 = inlined_call_operand.hbm [shape: f32[16,16], index: 7, kind: output, shape index: {}]  }
   0x1   :  { %13 = vsyncpa [#allocation6], 0 }
   0x2   :  { %14 = vsyncpa [#allocation4], 0 }
   0x3   :  { %16 = vsyncpa [#allocation4 + $0x1], 0  ;;  %s811_s24 = smov 0   ;;  %s813_s25 = smov 0  }
   0x4   :  { %s815_s26 = smov 0   ;;  %s817_s27 = smov 0  }
   0x5 LB: > { %s832_s28 = sadd.s32 4294967295, %s765_s27   ;;  %s523_s29 = sadd.s32 4294967294, %s765_s27   ;;  %s765_s27 = sphi %s817_s27, %s953_s27   ;;  %s761_s26 = sphi %s815_s26, %s952_s26   ;;  %s757_s25 = sphi %s813_s25, %s951_s25   ;;  %s753_s24 = sphi %s811_s24, %s950_s24  }
   0x6   : > { %s836_s30 = sadd.s32 1, %s765_s27   ;;  %s181_s8 = sadd.s32 1, %s761_s26 }
   0x7   : > { %s178_s9 = ssub.s32 %s765_s27, %s836_s30  ;;  %p191_p0 = scmp.ne.s32.totalorder %s761_s26, %s757_s25 }
   0x8   : > { %p179_p1 = scmp.eq.s32.totalorder %s178_s9, 0  ;;  %p192_p2 = scmp.eq.s32.totalorder %s832_s28, 1 }
   0x9   : > { %p197_p3 = scmp.ne.s32.totalorder %s757_s25, %s753_s24  ;;  %p198_p4 = scmp.eq.s32.totalorder %s523_s29, 1 }
   0xa   : > { %s847_s10 = scalar_select %p179_p1, %s761_s26, %s181_s8  }
   0xb   : > { %p849_p5 = por %p192_p2, %p191_p0  ;;  %p853_p6 = por %p198_p4, %p197_p3 }
   0xc   : > { %p524_p7 = scmp.ge.s32.totalorder %s765_s27, 1  ;;  %p205_p8 = scmp.lt.s32.totalorder %s765_s27, 3 }
   0xd   : > { %p591_p9 = scmp.eq.s32.totalorder %s832_s28, 0  ;;  %s216_s16 = sshll.u32 %s940_s1, 4  ;;  %s217_s16 = int_to_ptr.hbm [resolvable:$true] %s216_s16 }
   0xe   : > { %p860_p10 = pnand %p524_p7, %p205_p8  ;;  %s767_s17 = smov [#allocation2]  }
   0xf   : > { %s218_s18 = sshll.u32 %s767_s17, 4  ;;  %s233_s21 = sshll.u32 %s942_s3, 4  ;;  %s219_s18 = int_to_ptr.vmem [resolvable:$true] %s218_s18  ;;  %s234_s21 = int_to_ptr.hbm [resolvable:$true] %s233_s21 }
  0x10   : > { %p580_p11 = pneg %p860_p10  ;;  %s768_s22 = smov 64  }
  0x11   : > { %s769_s23 = smov 4   ;;  %s770_s29 = smov [#allocation5]  }
  0x12   : > { %p581_p12 = pnand %p591_p9, %p580_p11  ;;  %s235_s8 = sshll.u32 %s770_s29, 4  ;;  %s236_s8 = int_to_ptr.vmem [resolvable:$true] %s235_s8 }
  0x13   : > { %267 = sbr.rel (%p860_p10) target bundleno = 440 (0x1b8), region = 48 }
  0x14   : > { %583 = dma.hbm_to_vmem [thread:$0]  (!%p581_p12), %s217_s16, 256, %s219_s18, [#allocation3], %s768_s22, %s768_s22, %s769_s23  }
  0x15   : > { %586 = dma.hbm_to_vmem [thread:$0]  (!%p581_p12), %s234_s21, 256, %s236_s8, [#allocation6], %s768_s22, %s768_s22, %s769_s23  }
  0x18   : > { %740 = dma.done.wait (%p591_p9), [#allocation3], 256  }
  0x19   : > { %742 = vsyncadd (%p591_p9), [#allocation3], 4294967040 }
  0x1a   : > { %744 = dma.done.wait (%p591_p9), [#allocation6], 256  }
  0x1b   : > { %746 = vsyncadd (%p591_p9), [#allocation6], 4294967040  ;;  %p304_p13 = scmp.lt.s32.totalorder %s832_s28, 1  ;;  %v565_v0 = vld [vmem:[#allocation2 + $0x8] sm:$0xff]  ;;  %v564_v1 = vld [vmem:[#allocation2] sm:$0xff]  ;;  %vm331_vm0 = vcmask 261120  }
  0x1c   : > { %341 = vmatpush.bf16.msra.mxu0 %v565_v0  ;;  %v567_v4 = vld [vmem:[#allocation5 + $0x8] sm:$0xff]  ;;  %v566_v5 = vld [vmem:[#allocation5] sm:$0xff]  ;;  %v632_v6 = vld [vmem:[%s941_s2] ss:$0 sm:$0xff]  ;;  %s301_s8 = sand.u32 1, %s757_s25   ;;  %vm424_vm1 = vcmask 130048  }
  0x1d   : > { %s305_s9 = scalar_select %p304_p13, %s832_s28, 1  ;;  %379 = vmatpush.bf16.msra.mxu1 %v567_v4  ;;  %v569_v12 = vld [vmem:[%s944_s5 + $0x8] sm:$0xff]  ;;  %v568_v13 = vld [vmem:[%s944_s5] sm:$0xff] }
  0x1e   : > { %417 = vmatpush.bf16.msra.mxu2 %v569_v12  ;;  %v633_v14 = vld [vmem:[%s943_s4] ss:$0 sm:$0xff] }
  0x1f   : > { %s532_s14 = sshll.u32 %s305_s9, 3  ;;  %s561_s9 = sshll.u32 %s832_s28, 3  ;;  %v634_v20 = vld [vmem:[%s945_s6] ss:$0 sm:$0xff] }
  0x20   : > { %s307_s16 = scalar_lea.vmem %s939_s0, %s532_s14  ;;  %342 = vmatpush.bf16.msra.mxu0 %v564_v1  ;;  %s531_s14 = sshll.u32 %s301_s8, 3 }
  0x21   : > { %v309_v2 = vld [vmem:[%s307_s16] sm:$0xff]  ;;  %380 = vmatpush.bf16.msra.mxu1 %v566_v5  ;;  %s437_s16 = scalar_lea.hbm %s946_s7, %s561_s9  ;;  %s303_s19 = scalar_lea.vmem [#allocation7], %s531_s14 }
  0x22   : > { %v310_v3 = vpack.c.bf16 %v309_v2, %v309_v2  ;;  %418 = vmatpush.bf16.msra.mxu2 %v568_v13  ;;  %s439_s20 = sshll.u32 %s303_s19, 4  ;;  %s441_s21 = sshll.u32 %s437_s16, 4  ;;  %s440_s20 = int_to_ptr.vmem [resolvable:$true] %s439_s20  ;;  %s442_s21 = int_to_ptr.hbm [resolvable:$true] %s441_s21 }
  0x23   : > { %s427_s28 = scalar_lea.sflag [#allocation4], %s301_s8  ;;  %s709_s22 = sshra.s32 %s442_s21, 4  ;;  %s710_s22 = int_to_ptr.hbm [resolvable:$true] %s709_s22 }
  0x24   : > { %541 = vmatmul.msk.bf16.vlgmr.msra.gmra.mxu0 %vm331_vm0, %v310_v3  ;;  %s711_s23 = scalar_lea.hbm %s710_s22, 8  ;;  %s715_s14 = scalar_lea.hbm %s946_s7, 16 }
  0x25   : > { %p712_p0 = scmp.ne.s32.totalorder %s710_s22, %s711_s23  ;;  %p716_p3 = scmp.lt.s32.totalorder %s710_s22, %s946_s7 }
  0x26   : > { %p717_p4 = scmp.lt.s32.totalorder %s715_s14, %s711_s23 }
  0x27   : > { %p713_p1 = pnand %p712_p0, %p849_p5 }
  0x28   : > { %p718_p7 = por %p717_p4, %p716_p3 }
  0x29   : > { %p714_p2 = pneg %p713_p1 }
  0x2b   : > { %p719_p8 = pnand %p718_p7, %p714_p2 }
  0xa1   : > { %v344_v7 = vpop.f32.mrf.mxu0 }
  0xa2   : > { %v345_v8 = vadd.f32 %v632_v6, %v344_v7 }
  0xa4   : > { %v348_v9 = vmax.f32 %v345_v8, 0.0 }
  0xa6   : > { %v349_v10 = vpack.c.bf16 %v348_v9, %v348_v9 }
  0xa8   : > { %550 = vmatmul.msk.bf16.vlgmr.msra.gmra.mxu1 %vm331_vm0, %v349_v10 }
  0xa9   : > { %v346_v11 = vpop.f32.mrf.mxu0 }
 0x125   : > { %v382_v15 = vpop.f32.mrf.mxu1 }
 0x126   : > { %v383_v16 = vadd.f32 %v633_v14, %v382_v15 }
 0x128   : > { %v386_v17 = vmax.f32 %v383_v16, 0.0 }
 0x12a   : > { %v387_v18 = vpack.c.bf16 %v386_v17, %v386_v17 }
 0x12c   : > { %559 = vmatmul.msk.bf16.vlgmr.msra.gmra.mxu2 %vm331_vm0, %v387_v18 }
 0x12d   : > { %v384_v19 = vpop.f32.mrf.mxu1 }
 0x1af   : > { %v420_v21 = vpop.f32.mrf.mxu2 }
 0x1b0   : > { %v421_v22 = vadd.f32 %v634_v20, %v420_v21 }
 0x1b2   : > { %425 = vst.msk [vmem:[%s303_s19] sm:$0xff] %vm424_vm1, %v421_v22 }
 0x1b3   : > { %722 = shalt.err (!%p719_p8)
}
 0x1b4   : > { %578 = dma.vmem_to_hbm [thread:$0]  (%p849_p5), %s440_s20, 128, %s442_s21, %s427_s28  }
 0x1b7   : > { %v422_v23 = vpop.f32.mrf.mxu2 }
 0x1b8 PF: > { %p595_p9 = scmp.ge.s32.totalorder %s765_s27, 2  ;;  %s453_s8 = sand.u32 1, %s753_s24  }
 0x1b9   : > { %s454_s16 = scalar_lea.sflag [#allocation4], %s453_s8 }
 0x1ba   : > { %p588_p10 = pnand %p595_p9, %p853_p6 }
 0x1bc   : > { %p589_p11 = pneg %p588_p10 }
 0x1be   : > { %748 = dma.done.wait (%p589_p11), %s454_s16, 128  }
 0x1bf   : > { %750 = vsyncadd (%p589_p11), %s454_s16, 4294967168  ;;  %p19_p12 = scmp.ge.s32.totalorder %s836_s30, 4   ;;  %s950_s24 = smov %s757_s25 }
 0x1c0   : > { %s951_s25 = smov %s761_s26  ;;  %s952_s26 = smov %s847_s10 }
 0x1c1   : > { %s953_s27 = smov %s836_s30  ;;  %21 = sbr.rel (!%p19_p12) target bundleno = 5 (0x5), region = 92 }
 0x1c6   :  { %460 = vsyncpa [#allocation3], 1 }
 0x1c7   :  { %462 = vsyncpa [#allocation3 + $0x1], 1 }
 0x1c8   :  { %463 = vsyncpa [#allocation6], 1 }
 0x1c9   :  { %464 = vsyncpa [#allocation4], 1 }
 0x1ca   :  { %466 = vsyncpa [#allocation4 + $0x1], 1 }

</bundles_post_ra>
